<compile_context>
chip_gen: v7x
topology: tpu7x:2x2x1
jax: 0.10.0
libtpu: 0.0.40
codegen_flags: <defaults>
</compile_context>

<pallas_src>
import functools

import jax
import jax.numpy as jnp
from jax.experimental import pallas as pl
from jax.experimental.pallas import tpu as pltpu

_LANE = 128        # lane width: last dims padded to multiples of this
_SUBLANE = 16      # bf16 sublane packing; also valid for f32
_FIXED_SCRATCH = 2 << 20   # head-room for Mosaic internal scratch


def _round_up(x, m):
    return (x + m - 1) // m * m


def _vmem_budget_bytes():
    """~75% of this generation's physical VMEM (v5e/v6e 128 MiB, v7x 64 MiB)."""
    try:
        cap = int(pltpu.get_tpu_info().vmem_capacity_bytes)
    except Exception:
        cap = 64 << 20   # conservative default (v7x physical VMEM)
    return (cap * 3) // 4


# --------------------------------------------------------------------------
# Kernels
# --------------------------------------------------------------------------
def _mlp_fused_kernel(x_ref, w1_ref, b1_ref, w2_ref, b2_ref, o_ref):
    # x is cast to the weight dtype in-kernel (free VPU cast) so unpadded f32
    # inputs can stream straight from HBM without a wrapper pad/cast pass.
    x = x_ref[...].astype(w1_ref.dtype)
    # First linear on the MXU with f32 accumulation.
    h = jnp.dot(x, w1_ref[...], preferred_element_type=jnp.float32)
    # Bias + ReLU in f32 on the VPU.
    h = jnp.maximum(h + b1_ref[...], 0.0)
    # Second linear: downcast activation to the weight dtype for full MXU rate.
    out = jnp.dot(h.astype(w2_ref.dtype), w2_ref[...],
                  preferred_element_type=jnp.float32)
    o_ref[...] = (out + b2_ref[...]).astype(o_ref.dtype)


def _mlp_hidden_tiled_kernel(x_ref, w1_ref, b1_ref, w2_ref, b2_ref, o_ref,
                             acc_ref):
    # Weight-tiling fallback: the hidden dim is a reduction grid axis. For
    # hidden tile k compute relu(x @ W1[:, k] + b1[k]) and accumulate its
    # contribution through W2[k, :] into an f32 VMEM accumulator.
    k = pl.program_id(1)

    @pl.when(k == 0)
    def _():
        acc_ref[...] = jnp.zeros_like(acc_ref)

    x = x_ref[...].astype(w1_ref.dtype)
    h = jnp.dot(x, w1_ref[...], preferred_element_type=jnp.float32)
    h = jnp.maximum(h + b1_ref[...], 0.0)
    acc_ref[...] += jnp.dot(h.astype(w2_ref.dtype), w2_ref[...],
                            preferred_element_type=jnp.float32)

    @pl.when(k == pl.num_programs(1) - 1)
    def _():
        o_ref[...] = (acc_ref[...] + b2_ref[...]).astype(o_ref.dtype)


# --------------------------------------------------------------------------
# VMEM estimators (bytes)
# --------------------------------------------------------------------------
def _resident_est(bb, n_in_p, n_hid_p, n_out_p, x_bytes, out_bytes,
                  comp_bytes, x_bufs):
    weights = ((n_in_p * n_hid_p + n_hid_p * n_out_p) * comp_bytes
               + (n_hid_p + n_out_p) * 4)                       # single-buffered
    streams = (x_bufs * bb * n_in_p * x_bytes
               + 2 * bb * n_out_p * out_bytes)
    interm = (bb * n_in_p * comp_bytes        # in-kernel x cast
              + bb * n_hid_p * 4              # h (f32)
              + bb * n_hid_p * comp_bytes     # h downcast for second matmul
              + bb * n_out_p * 4              # out (f32)
              + bb * n_out_p * out_bytes)     # pre-store cast
    return weights + streams + interm + _FIXED_SCRATCH


def _tiled_est(bb, th, n_in_p, n_out_p, x_bytes, out_bytes, comp_bytes):
    weights = 2 * ((n_in_p * th + th * n_out_p) * comp_bytes + th * 4)  # streamed
    resident = n_out_p * 4                                              # b2
    streams = (2 * bb * n_in_p * x_bytes
               + 2 * bb * n_out_p * out_bytes)
    interm = (bb * n_in_p * comp_bytes
              + bb * th * 4 + bb * th * comp_bytes
              + bb * n_out_p * 4               # f32 accumulator scratch
              + bb * n_out_p * out_bytes)
    return weights + resident + streams + interm + _FIXED_SCRATCH


# --------------------------------------------------------------------------
# Wrapper
# --------------------------------------------------------------------------
@functools.partial(
    jax.jit,
    static_argnames=("block_b", "compute_dtype", "use_buffered",
                     "force_hidden_tiling", "hidden_block"))
def _mlp_forward_impl(x, w1, b1, w2, b2, *, block_b, compute_dtype,
                      use_buffered, force_hidden_tiling, hidden_block):
    B, n_in = x.shape
    n_hidden = w1.shape[0]
    n_out = w2.shape[0]
    out_dtype = x.dtype

    comp_bytes = jnp.dtype(compute_dtype).itemsize
    out_bytes = jnp.dtype(out_dtype).itemsize
    # Conservative streamed-x byte size (f32 if passed through unpadded).
    x_bytes = max(jnp.dtype(x.dtype).itemsize, comp_bytes)

    # Lane-dense padding targets for every feature dim.
    n_in_p = _round_up(n_in, _LANE)
    n_hid_p = _round_up(n_hidden, _LANE)
    n_out_p = _round_up(n_out, _LANE)

    budget = _vmem_budget_bytes()

    # ---- batch tile --------------------------------------------------------
    B16 = _round_up(B, _SUBLANE)
    bb = min(_round_up(block_b, _SUBLANE), B16)
    # Guarantee >= 2 batch grid steps whenever the batch allows it so the
    # "parallel" axis can be split across both v7x TensorCores.
    if B16 // bb < 2 and B16 >= 2 * _SUBLANE:
        bb = _round_up(-(-B16 // 2), _SUBLANE)

    # ---- resident vs. hidden-tiled weights ---------------------------------
    resident_weight_bytes = ((n_in_p * n_hid_p + n_hid_p * n_out_p) * comp_bytes
                             + (n_hid_p + n_out_p) * 4)
    tile_hidden = force_hidden_tiling or (resident_weight_bytes > budget // 2)

    if tile_hidden:
        th = hidden_block if hidden_block is not None else min(n_hid_p, 512)
        th = min(max(_LANE, _round_up(th, _LANE)), n_hid_p)
        while th > _LANE and _tiled_est(bb, th, n_in_p, n_out_p, x_bytes,
                                        out_bytes, comp_bytes) > budget:
            th = max(_LANE, _round_up(th // 2, _LANE))

        def est_fn(b):
            return _tiled_est(b, th, n_in_p, n_out_p, x_bytes, out_bytes,
                              comp_bytes)
    else:
        th = n_hid_p

        def est_fn(b):
            return _resident_est(b, n_in_p, n_hid_p, n_out_p, x_bytes,
                                 out_bytes, comp_bytes, x_bufs=2)

    # Shrink the batch tile until it fits the per-generation VMEM budget.
    while bb > _SUBLANE and est_fn(bb) > budget:
        bb = max(_SUBLANE, _round_up(bb // 2, _SUBLANE))

    B_p = _round_up(B, bb)
    grid_b = B_p // bb

    # ---- x: skip the pad/cast pass when already aligned --------------------
    if n_in_p == n_in and B_p == B:
        x_in = x                     # streamed as-is; cast to bf16 in-kernel
    else:
        x_in = jnp.zeros((B_p, n_in_p), compute_dtype)
        x_in = x_in.at[:B, :n_in].set(x.astype(compute_dtype))

    # ---- build specs / operands per path ------------------------------------
    if not tile_hidden:
        w1_p = jnp.zeros((n_in_p, n_hid_p), compute_dtype)
        w1_p = w1_p.at[:n_in, :n_hidden].set(w1.T.astype(compute_dtype))
        w2_p = jnp.zeros((n_hid_p, n_out_p), compute_dtype)
        w2_p = w2_p.at[:n_hidden, :n_out].set(w2.T.astype(compute_dtype))
        b1_p = jnp.zeros((1, n_hid_p), jnp.float32)
        b1_p = b1_p.at[0, :n_hidden].set(b1.astype(jnp.float32))
        b2_p = jnp.zeros((1, n_out_p), jnp.float32)
        b2_p = b2_p.at[0, :n_out].set(b2.astype(jnp.float32))

        # Deepen pipelining of the streamed x tiles when VMEM allows.
        x_bufs = 2
        if use_buffered and _resident_est(bb, n_in_p, n_hid_p, n_out_p,
                                          x_bytes, out_bytes, comp_bytes,
                                          x_bufs=3) <= budget:
            x_bufs = 3
        vmem_est = _resident_est(bb, n_in_p, n_hid_p, n_out_p, x_bytes,
                                 out_bytes, comp_bytes, x_bufs=x_bufs)

        if use_buffered and x_bufs == 3:
            x_spec = pl.BlockSpec((bb, n_in_p), lambda i: (i, 0),
                                  pipeline_mode=pl.Buffered(3))
        else:
            x_spec = pl.BlockSpec((bb, n_in_p), lambda i: (i, 0))

        def const_spec(shape):
            # Resident (constant index_map) weights/biases: single-buffer so
            # they do not reserve a useless second pipeline copy in VMEM.
            if use_buffered:
                return pl.BlockSpec(shape, lambda i: (0, 0),
                                    pipeline_mode=pl.Buffered(1))
            return pl.BlockSpec(shape, lambda i: (0, 0))

        kernel = _mlp_fused_kernel
        grid = (grid_b,)
        in_specs = [
            x_spec,
            const_spec((n_in_p, n_hid_p)),
            const_spec((1, n_hid_p)),
            const_spec((n_hid_p, n_out_p)),
            const_spec((1, n_out_p)),
        ]
        out_specs = pl.BlockSpec((bb, n_out_p), lambda i: (i, 0))
        scratch_shapes = []
        dim_sem = ("parallel",)
        n_hid_eff = n_hid_p
    else:
        n_hid_t = _round_up(n_hid_p, th)
        grid_k = n_hid_t // th
        w1_p = jnp.zeros((n_in_p, n_hid_t), compute_dtype)
        w1_p = w1_p.at[:n_in, :n_hidden].set(w1.T.astype(compute_dtype))
        w2_p = jnp.zeros((n_hid_t, n_out_p), compute_dtype)
        w2_p = w2_p.at[:n_hidden, :n_out].set(w2.T.astype(compute_dtype))
        b1_p = jnp.zeros((1, n_hid_t), jnp.float32)
        b1_p = b1_p.at[0, :n_hidden].set(b1.astype(jnp.float32))
        b2_p = jnp.zeros((1, n_out_p), jnp.float32)
        b2_p = b2_p.at[0, :n_out].set(b2.astype(jnp.float32))

        vmem_est = _tiled_est(bb, th, n_in_p, n_out_p, x_bytes, out_bytes,
                              comp_bytes)

        if use_buffered:
            b2_spec = pl.BlockSpec((1, n_out_p), lambda i, k: (0, 0),
                                   pipeline_mode=pl.Buffered(1))
        else:
            b2_spec = pl.BlockSpec((1, n_out_p), lambda i, k: (0, 0))

        kernel = _mlp_hidden_tiled_kernel
        grid = (grid_b, grid_k)
        in_specs = [
            pl.BlockSpec((bb, n_in_p), lambda i, k: (i, 0)),   # x (resident/row)
            pl.BlockSpec((n_in_p, th), lambda i, k: (0, k)),   # W1 tile (streamed)
            pl.BlockSpec((1, th), lambda i, k: (0, k)),        # b1 tile
            pl.BlockSpec((th, n_out_p), lambda i, k: (k, 0)),  # W2 tile (streamed)
            b2_spec,                                           # b2 (resident)
        ]
        out_specs = pl.BlockSpec((bb, n_out_p), lambda i, k: (i, 0))
        scratch_shapes = [pltpu.VMEM((bb, n_out_p), jnp.float32)]
        dim_sem = ("parallel", "arbitrary")
        n_hid_eff = n_hid_t

    vmem_limit = int(min(max(vmem_est, 16 << 20), budget))

    flops = 2 * B_p * n_in_p * n_hid_eff + 2 * B_p * n_hid_eff * n_out_p
    bytes_accessed = int(
        B_p * n_in_p * x_bytes
        + (w1_p.size + w2_p.size) * comp_bytes
        + (b1_p.size + b2_p.size) * 4
        + B_p * n_out_p * out_bytes)

    out_p = pl.pallas_call(
        kernel,
        out_shape=jax.ShapeDtypeStruct((B_p, n_out_p), out_dtype),
        grid_spec=pltpu.PrefetchScalarGridSpec(
            num_scalar_prefetch=0,
            grid=grid,
            in_specs=in_specs,
            out_specs=out_specs,
            scratch_shapes=scratch_shapes,
        ),
        compiler_params=pltpu.CompilerParams(
            dimension_semantics=dim_sem,
            vmem_limit_bytes=vmem_limit,
        ),
        cost_estimate=pl.CostEstimate(
            flops=flops, transcendentals=0, bytes_accessed=bytes_accessed),
    )(x_in, w1_p, b1_p, w2_p, b2_p)

    # Skip the output slice pass entirely when already aligned.
    if B_p == B and n_out_p == n_out:
        return out_p
    return out_p[:B, :n_out]


def mlp_forward(x, w1, b1, w2, b2, *, block_b=512, compute_dtype=jnp.bfloat16,
                force_hidden_tiling=False, hidden_block=None):
    """Fused Linear -> ReLU -> Linear.

    x: (B, n_in); w1: (n_hidden, n_in); b1: (n_hidden,);
    w2: (n_out, n_hidden); b2: (n_out,)   (PyTorch nn.Linear layout).
    """
    kwargs = dict(block_b=block_b, compute_dtype=compute_dtype,
                  force_hidden_tiling=force_hidden_tiling,
                  hidden_block=hidden_block)
    try:
        return _mlp_forward_impl(x, w1, b1, w2, b2, use_buffered=True, **kwargs)
    except Exception:
        # Fallback for JAX versions without per-BlockSpec pipeline_mode
        # support (weights simply stay double-buffered, x stays 2-deep).
        return _mlp_forward_impl(x, w1, b1, w2, b2, use_buffered=False,
                                 **kwargs)


# --------------------------------------------------------------------------
# Reference / params / demo
# --------------------------------------------------------------------------
def init_mlp_params(key, n_in, n_hidden, n_out, dtype=jnp.float32):
    """Deterministic synthetic parameters matching nn.Linear shapes
    (weights stored as (out_features, in_features), PyTorch convention)."""
    k1, k2, k3, k4 = jax.random.split(key, 4)
    s1 = 1.0 / jnp.sqrt(jnp.asarray(n_in, dtype))
    s2 = 1.0 / jnp.sqrt(jnp.asarray(n_hidden, dtype))
    w1 = jax.random.uniform(k1, (n_hidden, n_in), dtype, -s1, s1)
    b1 = jax.random.uniform(k2, (n_hidden,), dtype, -s1, s1)
    w2 = jax.random.uniform(k3, (n_out, n_hidden), dtype, -s2, s2)
    b2 = jax.random.uniform(k4, (n_out,), dtype, -s2, s2)
    return w1, b1, w2, b2


def mlp_reference(x, w1, b1, w2, b2):
    """Pure-JAX f32 reference mirroring the PyTorch forward."""
    h = x @ w1.T + b1
    h = jnp.maximum(h, 0.0)
    return h @ w2.T + b2


if __name__ == "__main__":
    key = jax.random.PRNGKey(0)
    kx1, kp1, kx2, kp2, kx3, kp3 = jax.random.split(key, 6)

    # --- Test 1: module-consistent small dims, resident fused path ---------
    # batch=256 with the >=2-step rule -> 2 parallel 128-row tiles (both v7x TCs).
    n_in, n_hidden, n_out = 16, 32, 8
    batch = 256
    x = jax.random.normal(kx1, (batch, n_in), jnp.float32)
    w1, b1, w2, b2 = init_mlp_params(kp1, n_in, n_hidden, n_out)
    out = jax.block_until_ready(mlp_forward(x, w1, b1, w2, b2))
    ref = mlp_reference(x, w1, b1, w2, b2)
    assert out.shape == (batch, n_out)
    assert out.dtype == jnp.float32
    assert jnp.allclose(out, ref, atol=5e-2, rtol=5e-2), (
        f"mismatch (fused path): max abs err {jnp.max(jnp.abs(out - ref))}")

    # --- Test 2: lane/batch aligned -> no wrapper pad/cast, no output slice -
    x2 = jax.random.normal(kx2, (256, 128), jnp.float32)
    w1b, b1b, w2b, b2b = init_mlp_params(kp2, 128, 256, 128)
    out2 = jax.block_until_ready(mlp_forward(x2, w1b, b1b, w2b, b2b))
    ref2 = mlp_reference(x2, w1b, b1b, w2b, b2b)
    assert out2.shape == (256, 128)
    assert jnp.allclose(out2, ref2, atol=5e-2, rtol=5e-2), (
        f"mismatch (aligned path): max abs err {jnp.max(jnp.abs(out2 - ref2))}")

    # --- Test 3: hidden-tiled (reduction-grid) weight fallback path ---------
    x3 = jax.random.normal(kx3, (96, 64), jnp.float32)
    w1c, b1c, w2c, b2c = init_mlp_params(kp3, 64, 256, 32)
    out3 = jax.block_until_ready(
        mlp_forward(x3, w1c, b1c, w2c, b2c,
                    force_hidden_tiling=True, hidden_block=128))
    ref3 = mlp_reference(x3, w1c, b1c, w2c, b2c)
    assert out3.shape == (96, 32)
    assert jnp.allclose(out3, ref3, atol=5e-2, rtol=5e-2), (
        f"mismatch (tiled path): max abs err {jnp.max(jnp.abs(out3 - ref3))}")

    print("KERNEL_OK")
</pallas_src>

<mosaic_0001>
module attributes {stable_mosaic.version = 11 : i64} {
  func.func @_mlp_fused_kernel(%arg0: i32, %arg1: memref<128x128xbf16, #tpu.memory_space<vmem>>, %arg2: memref<128x128xbf16, #tpu.memory_space<vmem>>, %arg3: memref<1x128xf32, #tpu.memory_space<vmem>>, %arg4: memref<128x128xbf16, #tpu.memory_space<vmem>>, %arg5: memref<1x128xf32, #tpu.memory_space<vmem>>, %arg6: memref<128x128xf32, #tpu.memory_space<vmem>>) attributes {dimension_semantics = [#tpu.dimension_semantics<parallel>], iteration_bounds = array<i64: 2>, scalar_prefetch = 0 : i64, scratch_operands = 0 : i64, tpu.core_type = #tpu.core_type<tc>, window_params = [{transform_indices = @transform_0, window_bounds = array<i64: 128, 128>}, {pipeline_mode = #tpu.pipeline_mode<synchronous>, transform_indices = @transform_1, window_bounds = array<i64: 128, 128>}, {pipeline_mode = #tpu.pipeline_mode<synchronous>, transform_indices = @transform_2, window_bounds = array<i64: 1, 128>}, {pipeline_mode = #tpu.pipeline_mode<synchronous>, transform_indices = @transform_3, window_bounds = array<i64: 128, 128>}, {pipeline_mode = #tpu.pipeline_mode<synchronous>, transform_indices = @transform_4, window_bounds = array<i64: 1, 128>}, {transform_indices = @transform_5, window_bounds = array<i64: 128, 128>}]} {
    %c0 = arith.constant 0 : index
    %c0_0 = arith.constant 0 : index
    %0 = vector.load %arg1[%c0, %c0_0] : memref<128x128xbf16, #tpu.memory_space<vmem>>, vector<128x128xbf16>
    %c0_1 = arith.constant 0 : index
    %c0_2 = arith.constant 0 : index
    %1 = vector.load %arg2[%c0_1, %c0_2] : memref<128x128xbf16, #tpu.memory_space<vmem>>, vector<128x128xbf16>
    %cst = arith.constant dense<0.000000e+00> : vector<128x128xf32>
    %2 = tpu.matmul %0, %1, %cst {dimension_numbers = #tpu.dot_dimension_numbers<[1], [0], [0], [1], [0, 0, 1, 1], [], []>} : vector<128x128xbf16>, vector<128x128xbf16>, vector<128x128xf32> -> vector<128x128xf32>
    %c0_3 = arith.constant 0 : index
    %c0_4 = arith.constant 0 : index
    %3 = vector.load %arg3[%c0_3, %c0_4] : memref<1x128xf32, #tpu.memory_space<vmem>>, vector<1x128xf32>
    %4 = vector.broadcast %3 : vector<1x128xf32> to vector<128x128xf32>
    %5 = arith.addf %2, %4 : vector<128x128xf32>
    %cst_5 = arith.constant 0.000000e+00 : f32
    %6 = vector.broadcast %cst_5 : f32 to vector<128x128xf32>
    %7 = arith.maximumf %5, %6 : vector<128x128xf32>
    %8 = arith.truncf %7 : vector<128x128xf32> to vector<128x128xbf16>
    %c0_6 = arith.constant 0 : index
    %c0_7 = arith.constant 0 : index
    %9 = vector.load %arg4[%c0_6, %c0_7] : memref<128x128xbf16, #tpu.memory_space<vmem>>, vector<128x128xbf16>
    %cst_8 = arith.constant dense<0.000000e+00> : vector<128x128xf32>
    %10 = tpu.matmul %8, %9, %cst_8 {dimension_numbers = #tpu.dot_dimension_numbers<[1], [0], [0], [1], [0, 0, 1, 1], [], []>} : vector<128x128xbf16>, vector<128x128xbf16>, vector<128x128xf32> -> vector<128x128xf32>
    %c0_9 = arith.constant 0 : index
    %c0_10 = arith.constant 0 : index
    %11 = vector.load %arg5[%c0_9, %c0_10] : memref<1x128xf32, #tpu.memory_space<vmem>>, vector<1x128xf32>
    %12 = vector.broadcast %11 : vector<1x128xf32> to vector<128x128xf32>
    %13 = arith.addf %10, %12 : vector<128x128xf32>
    %c0_11 = arith.constant 0 : index
    %c0_12 = arith.constant 0 : index
    %14 = vector.load %arg6[%c0_11, %c0_12] : memref<128x128xf32, #tpu.memory_space<vmem>>, vector<128x128xf32>
    tpu.vector_store %arg6[%c0_11, %c0_12], %13 {strides = array<i32>} : memref<128x128xf32, #tpu.memory_space<vmem>>, vector<128x128xf32>,
    return
  }
  func.func @transform_0(%arg0: i32) -> (i32, i32) {
    %c0_i32 = arith.constant 0 : i32
    %c0_i32_0 = arith.constant 0 : i32
    return %arg0, %c0_i32 : i32, i32
  }
  func.func @transform_1(%arg0: i32) -> (i32, i32) {
    %c0_i32 = arith.constant 0 : i32
    %c0_i32_0 = arith.constant 0 : i32
    %c0_i32_1 = arith.constant 0 : i32
    return %c0_i32, %c0_i32_0 : i32, i32
  }
  func.func @transform_2(%arg0: i32) -> (i32, i32) {
    %c0_i32 = arith.constant 0 : i32
    %c0_i32_0 = arith.constant 0 : i32
    %c0_i32_1 = arith.constant 0 : i32
    return %c0_i32, %c0_i32_0 : i32, i32
  }
  func.func @transform_3(%arg0: i32) -> (i32, i32) {
    %c0_i32 = arith.constant 0 : i32
    %c0_i32_0 = arith.constant 0 : i32
    %c0_i32_1 = arith.constant 0 : i32
    return %c0_i32, %c0_i32_0 : i32, i32
  }
  func.func @transform_4(%arg0: i32) -> (i32, i32) {
    %c0_i32 = arith.constant 0 : i32
    %c0_i32_0 = arith.constant 0 : i32
    %c0_i32_1 = arith.constant 0 : i32
    return %c0_i32, %c0_i32_0 : i32, i32
  }
  func.func @transform_5(%arg0: i32) -> (i32, i32) {
    %c0_i32 = arith.constant 0 : i32
    %c0_i32_0 = arith.constant 0 : i32
    return %arg0, %c0_i32 : i32, i32
  }
}

</mosaic_0001>

<bundles_post_ra>
// kernel: _mlp_forward_impl.1
= control target key start
LH: loop header
LB: loop body
LE: loop exit
PB: predicated region body
PF: predicated region fallthrough
CT: control target
= control target key end

     0   :  { %s928_s18 = smov 0   ;;  %s1031_s0 = inlined_call_operand.vmem [shape: bf16[256,128], index: 0, kind: input, shape index: {}]   ;;  %s1032_s1 = inlined_call_operand.vmem [shape: bf16[128,128], index: 1, kind: input, shape index: {}]   ;;  %s1033_s2 = inlined_call_operand.vmem [shape: f32[1,128], index: 2, kind: input, shape index: {}]   ;;  %s1034_s3 = inlined_call_operand.vmem [shape: bf16[128,128], index: 3, kind: input, shape index: {}]   ;;  %s1035_s4 = inlined_call_operand.vmem [shape: f32[1,128], index: 4, kind: input, shape index: {}]   ;;  %s1036_s5 = inlined_call_operand.vmem [shape: f32[256,128], index: 5, kind: output, shape index: {}]  }
   0x1 LB: > { %s725_s19 = sadd.s32 4294967295, %s896_s18   ;;  %p729_p0 = scmp.ge.s32.totalorder %s896_s18, 1  ;;  %s896_s18 = sphi %s928_s18, %s15_s18  }
   0x2   : > { %p188_p1 = scmp.lt.s32.totalorder %s896_s18, 3 }
   0x4   : > { %p189_p2 = pnand %p729_p0, %p188_p1 }
   0x5   : > { %v866_v0 = vld [vmem:[%s1032_s1] sm:$0xff] (!%p189_p2)   ;;  %s730_s22 = sshll.u32 (!%p189_p2), %s725_s19, 4  ;;  %v867_v1 = vld [vmem:[%s1032_s1 + $0x8] sm:$0xff] (!%p189_p2)   ;;  %v868_v2 = vld [vmem:[%s1032_s1 + $0x10] sm:$0xff] (!%p189_p2)  }
   0x6   : > { %192 = sbr.rel (%p189_p2) target bundleno = 502 (0x1f6), region = 40  ;;  %p217_p3 = scmp.lt.s32.totalorder (!%p189_p2), %s730_s22, 31  ;;  %794 = vmatprep.subr.bf16.mxu0 (!%p189_p2), %v866_v0  ;;  %v869_v3 = vld [vmem:[%s1032_s1 + $0x18] sm:$0xff] (!%p189_p2)   ;;  %v870_v5 = vld [vmem:[%s1032_s1 + $0x20] sm:$0xff] (!%p189_p2)   ;;  %v871_v6 = vld [vmem:[%s1032_s1 + $0x28] sm:$0xff] (!%p189_p2)  }
   0x7   : > { %795 = vmatpush3.bf16.msra.mxu0 (!%p189_p2), %v866_v0  ;;  %v882_v7 = vld [vmem:[%s1034_s3] sm:$0xff] (!%p189_p2)   ;;  %v883_v8 = vld [vmem:[%s1034_s3 + $0x8] sm:$0xff] (!%p189_p2)   ;;  %v872_v9 = vld [vmem:[%s1032_s1 + $0x30] sm:$0xff] (!%p189_p2)  }
   0x8   : > { %796 = vmatprep.subr.bf16.mxu0 (!%p189_p2), %v867_v1  ;;  %826 = vmatprep.subr.bf16.mxu1 (!%p189_p2), %v882_v7  ;;  %v884_v10 = vld [vmem:[%s1034_s3 + $0x10] sm:$0xff] (!%p189_p2)   ;;  %v873_v11 = vld [vmem:[%s1032_s1 + $0x38] sm:$0xff] (!%p189_p2)   ;;  %v886_v13 = vld [vmem:[%s1034_s3 + $0x20] sm:$0xff] (!%p189_p2)  }
   0x9   : > { %827 = vmatpush3.bf16.msra.mxu1 (!%p189_p2), %v882_v7  ;;  %v885_v12 = vld [vmem:[%s1034_s3 + $0x18] sm:$0xff] (!%p189_p2)   ;;  %v887_v16 = vld [vmem:[%s1034_s3 + $0x28] sm:$0xff] (!%p189_p2)   ;;  %v888_v22 = vld [vmem:[%s1034_s3 + $0x30] sm:$0xff] (!%p189_p2)  }
   0xa   : > { %828 = vmatprep.subr.bf16.mxu1 (!%p189_p2), %v883_v8  ;;  %v889_v23 = vld [vmem:[%s1034_s3 + $0x38] sm:$0xff] (!%p189_p2)   ;;  %v734_v24 = vld [vmem:[%s1033_s2] ss:$0 sm:$0xff] (!%p189_p2) }
   0xb   : > { %797 = vmatpush3.bf16.msra.mxu0 (!%p189_p2), %v867_v1 }
   0xc   : > { %798 = vmatprep.subr.bf16.mxu0 (!%p189_p2), %v868_v2 }
   0xd   : > { %s1038_s22 = smov (!%p217_p3, %s730_s22), 31  ;;  %829 = vmatpush3.bf16.msra.mxu1 %v883_v8 }
   0xe   : > { %s731_s27 = sshll.u32 %s1038_s22, 2  ;;  %830 = vmatprep.subr.bf16.mxu1 %v884_v10 }
   0xf   : > { %s951_s30 = scalar_lea.vmem %s1031_s0, %s731_s27  ;;  %799 = vmatpush3.bf16.msra.mxu0 %v868_v2 }
  0x10   : > { %v874_v4 = vld [vmem:[%s951_s30] sm:$0xff]   ;;  %800 = vmatprep.subr.bf16.mxu0 %v869_v3  ;;  %v875_v14 = vld [vmem:[%s951_s30 + $0x8] sm:$0xff]   ;;  %v876_v15 = vld [vmem:[%s951_s30 + $0x10] sm:$0xff]  }
  0x11   : > { %810 = vmatprep.mubr.bf16.mxu0 %v874_v4  ;;  %831 = vmatpush3.bf16.msra.mxu1 %v884_v10  ;;  %v877_v17 = vld [vmem:[%s951_s30 + $0x18] sm:$0xff]   ;;  %v878_v18 = vld [vmem:[%s951_s30 + $0x20] sm:$0xff]   ;;  %v879_v19 = vld [vmem:[%s951_s30 + $0x28] sm:$0xff]  }
  0x12   : > { %832 = vmatprep.subr.bf16.mxu1 %v885_v12  ;;  %v880_v20 = vld [vmem:[%s951_s30 + $0x30] sm:$0xff]   ;;  %v881_v21 = vld [vmem:[%s951_s30 + $0x38] sm:$0xff]   ;;  %s733_s30 = sshll.u32 %s1038_s22, 3 }
  0x13   : > { %801 = vmatpush3.bf16.msra.mxu0 %v869_v3  ;;  %s1010_s16 = scalar_lea.vmem %s1036_s5, %s733_s30 }
  0x14   : > { %802 = vmatprep.subr.bf16.mxu0 %v870_v5 }
  0x15   : > { %833 = vmatpush3.bf16.msra.mxu1 %v885_v12 }
  0x16   : > { %834 = vmatprep.subr.bf16.mxu1 %v886_v13 }
  0x17   : > { %803 = vmatpush3.bf16.msra.mxu0 %v870_v5 }
  0x18   : > { %804 = vmatprep.subr.bf16.mxu0 %v871_v6 }
  0x19   : > { %835 = vmatpush3.bf16.msra.mxu1 %v886_v13 }
  0x1a   : > { %836 = vmatprep.subr.bf16.mxu1 %v887_v16 }
  0x1b   : > { %805 = vmatpush3.bf16.msra.mxu0 %v871_v6 }
  0x1c   : > { %806 = vmatprep.subr.bf16.mxu0 %v872_v9 }
  0x1d   : > { %837 = vmatpush3.bf16.msra.mxu1 %v887_v16 }
  0x1e   : > { %838 = vmatprep.subr.bf16.mxu1 %v888_v22 }
  0x1f   : > { %807 = vmatpush3.bf16.msra.mxu0 %v872_v9 }
  0x20   : > { %808 = vmatprep.subr.bf16.mxu0 %v873_v11 }
  0x21   : > { %839 = vmatpush3.bf16.msra.mxu1 %v888_v22 }
  0x22   : > { %840 = vmatprep.subr.bf16.mxu1 %v889_v23 }
  0x23   : > { %809 = vmatpush3.bf16.msra.mxu0 %v873_v11 }
  0x25   : > { %841 = vmatpush3.bf16.msra.mxu1 %v889_v23 }
  0x26   : > { %811 = vmatmul.mubr.bf16.vlgmr.msra.gmra.mrb[0].mxu0 %v875_v14 }
  0x27   : > { %814 = vmatprep.mubr.bf16.mxu0 %v876_v15 }
  0x2e   : > { %815 = vmatmul.mubr.bf16.gmra.mrb[4].mxu0 %v877_v17  ;;  %v751_v17 = vld [vmem:[%s1035_s4] ss:$0 sm:$0xff] }
  0x2f   : > { %818 = vmatprep.mubr.bf16.mxu0 %v878_v18 }
  0x36   : > { %819 = vmatmul.mubr.bf16.gmra.mrb[8].mxu0 %v879_v19 }
  0x37   : > { %822 = vmatprep.mubr.bf16.mxu0 %v880_v20 }
  0x3e   : > { %823 = vmatmul.mubr.bf16.gmra.mrb[12].mxu0 %v881_v21 }
  0xf9   : > { %v812_v25 = vpop.f32.mrb[0].mxu0 }
  0xfa   : > { %v407_v26 = vadd.f32 %v812_v25, %v734_v24  ;;  %v398_v27 = vpop.f32.mrb[1].mxu0 }
  0xfb   : > { %v399_v28 = vadd.f32 %v734_v24, %v398_v27  ;;  %v813_v29 = vpop.f32.mrb[2].mxu0 }
  0xfc   : > { %v410_v30 = vadd.f32 %v813_v29, %v734_v24  ;;  %v401_v31 = vpop.f32.mrb[3].mxu0  ;;  %v463_v33 = vmax.f32 %v407_v26, 0.0 }
  0xfd   : > { %v402_v32 = vadd.f32 %v734_v24, %v401_v31  ;;  %v461_v35 = vmax.f32 %v399_v28, 0.0 }
  0xfe   : > { %v464_v34 = vmax.f32 %v410_v30, 0.0 }
  0xff   : > { %v462_v36 = vmax.f32 %v402_v32, 0.0 }
 0x100   : > { %v478_v37 = vpack.c.bf16 %v464_v34, %v463_v33 }
 0x101   : > { %v816_v38 = vpop.f32.mrb[4].mxu0  ;;  %v477_v39 = vpack.c.bf16 %v462_v36, %v461_v35 }
 0x102   : > { %v423_v40 = vadd.f32 %v816_v38, %v734_v24  ;;  %v414_v41 = vpop.f32.mrb[5].mxu0 }
 0x103   : > { %v415_v42 = vadd.f32 %v734_v24, %v414_v41  ;;  %v817_v43 = vpop.f32.mrb[6].mxu0  ;;  %842 = vmatprep.mubr.bf16.mxu1 %v477_v39 }
 0x104   : > { %v426_v44 = vadd.f32 %v817_v43, %v734_v24  ;;  %v417_v45 = vpop.f32.mrb[7].mxu0  ;;  %843 = vmatmul.mubr.bf16.vlgmr.msra.gmra.mrb[0].mxu1 %v478_v37  ;;  %v467_v47 = vmax.f32 %v423_v40, 0.0 }
 0x105   : > { %v418_v46 = vadd.f32 %v734_v24, %v417_v45  ;;  %v465_v49 = vmax.f32 %v415_v42, 0.0 }
 0x106   : > { %v468_v48 = vmax.f32 %v426_v44, 0.0 }
 0x107   : > { %v466_v50 = vmax.f32 %v418_v46, 0.0 }
 0x108   : > { %v480_v51 = vpack.c.bf16 %v468_v48, %v467_v47 }
 0x109   : > { %v479_v52 = vpack.c.bf16 %v466_v50, %v465_v49  ;;  %v820_v53 = vpop.f32.mrb[8].mxu0 }
 0x10a   : > { %v439_v54 = vadd.f32 %v820_v53, %v734_v24  ;;  %v430_v55 = vpop.f32.mrb[9].mxu0 }
 0x10b   : > { %v431_v56 = vadd.f32 %v734_v24, %v430_v55  ;;  %v821_v57 = vpop.f32.mrb[10].mxu0  ;;  %846 = vmatprep.mubr.bf16.mxu1 %v479_v52 }
 0x10c   : > { %v442_v58 = vadd.f32 %v821_v57, %v734_v24  ;;  %v433_v59 = vpop.f32.mrb[11].mxu0  ;;  %847 = vmatmul.mubr.bf16.gmra.mrb[4].mxu1 %v480_v51  ;;  %v471_v61 = vmax.f32 %v439_v54, 0.0 }
 0x10d   : > { %v434_v60 = vadd.f32 %v734_v24, %v433_v59  ;;  %v469_v63 = vmax.f32 %v431_v56, 0.0 }
 0x10e   : > { %v472_v62 = vmax.f32 %v442_v58, 0.0 }
 0x10f   : > { %v470_v0 = vmax.f32 %v434_v60, 0.0 }
 0x110   : > { %v482_v1 = vpack.c.bf16 %v472_v62, %v471_v61 }
 0x111   : > { %v481_v2 = vpack.c.bf16 %v470_v0, %v469_v63  ;;  %v824_v3 = vpop.f32.mrb[12].mxu0 }
 0x112   : > { %v455_v4 = vadd.f32 %v824_v3, %v734_v24  ;;  %v446_v5 = vpop.f32.mrb[13].mxu0 }
 0x113   : > { %v447_v6 = vadd.f32 %v734_v24, %v446_v5  ;;  %v825_v7 = vpop.f32.mrb[14].mxu0  ;;  %850 = vmatprep.mubr.bf16.mxu1 %v481_v2 }
 0x114   : > { %v458_v8 = vadd.f32 %v825_v7, %v734_v24  ;;  %v449_v9 = vpop.f32.mrb[15].mxu0  ;;  %851 = vmatmul.mubr.bf16.gmra.mrb[8].mxu1 %v482_v1  ;;  %v475_v11 = vmax.f32 %v455_v4, 0.0 }
 0x115   : > { %v450_v10 = vadd.f32 %v734_v24, %v449_v9  ;;  %v473_v13 = vmax.f32 %v447_v6, 0.0 }
 0x116   : > { %v476_v12 = vmax.f32 %v458_v8, 0.0 }
 0x117   : > { %v474_v14 = vmax.f32 %v450_v10, 0.0 }
 0x118   : > { %v484_v15 = vpack.c.bf16 %v476_v12, %v475_v11 }
 0x119   : > { %v483_v16 = vpack.c.bf16 %v474_v14, %v473_v13 }
 0x11b   : > { %854 = vmatprep.mubr.bf16.mxu1 %v483_v16 }
 0x11c   : > { %855 = vmatmul.mubr.bf16.gmra.mrb[12].mxu1 %v484_v15 }
 0x1d7   : > { %v844_v18 = vpop.f32.mrb[0].mxu1 }
 0x1d8   : > { %v599_v19 = vadd.f32 %v844_v18, %v751_v17  ;;  %v590_v20 = vpop.f32.mrb[1].mxu1 }
 0x1d9   : > { %v591_v21 = vadd.f32 %v751_v17, %v590_v20  ;;  %v845_v22 = vpop.f32.mrb[2].mxu1 }
 0x1da   : > { %655 = vst [vmem:[%s1010_s16 + $0x10] sm:$0xff] %v599_v19  ;;  %v602_v23 = vadd.f32 %v845_v22, %v751_v17  ;;  %v593_v24 = vpop.f32.mrb[3].mxu1 }
 0x1db   : > { %653 = vst [vmem:[%s1010_s16] sm:$0xff] %v591_v21  ;;  %v594_v25 = vadd.f32 %v751_v17, %v593_v24 }
 0x1dc   : > { %656 = vst [vmem:[%s1010_s16 + $0x18] sm:$0xff] %v602_v23 }
 0x1dd   : > { %654 = vst [vmem:[%s1010_s16 + $0x8] sm:$0xff] %v594_v25 }
 0x1df   : > { %v848_v26 = vpop.f32.mrb[4].mxu1 }
 0x1e0   : > { %v615_v27 = vadd.f32 %v848_v26, %v751_v17  ;;  %v606_v28 = vpop.f32.mrb[5].mxu1 }
 0x1e1   : > { %v607_v29 = vadd.f32 %v751_v17, %v606_v28  ;;  %v849_v30 = vpop.f32.mrb[6].mxu1 }
 0x1e2   : > { %659 = vst [vmem:[%s1010_s16 + $0x30] sm:$0xff] %v615_v27  ;;  %v618_v31 = vadd.f32 %v849_v30, %v751_v17  ;;  %v609_v32 = vpop.f32.mrb[7].mxu1 }
 0x1e3   : > { %657 = vst [vmem:[%s1010_s16 + $0x20] sm:$0xff] %v607_v29  ;;  %v610_v33 = vadd.f32 %v751_v17, %v609_v32 }
 0x1e4   : > { %660 = vst [vmem:[%s1010_s16 + $0x38] sm:$0xff] %v618_v31 }
 0x1e5   : > { %658 = vst [vmem:[%s1010_s16 + $0x28] sm:$0xff] %v610_v33 }
 0x1e7   : > { %v852_v34 = vpop.f32.mrb[8].mxu1 }
 0x1e8   : > { %v631_v35 = vadd.f32 %v852_v34, %v751_v17  ;;  %v622_v36 = vpop.f32.mrb[9].mxu1 }
 0x1e9   : > { %v623_v37 = vadd.f32 %v751_v17, %v622_v36  ;;  %v853_v38 = vpop.f32.mrb[10].mxu1 }
 0x1ea   : > { %663 = vst [vmem:[%s1010_s16 + $0x50] sm:$0xff] %v631_v35  ;;  %v634_v39 = vadd.f32 %v853_v38, %v751_v17  ;;  %v625_v40 = vpop.f32.mrb[11].mxu1 }
 0x1eb   : > { %661 = vst [vmem:[%s1010_s16 + $0x40] sm:$0xff] %v623_v37  ;;  %v626_v41 = vadd.f32 %v751_v17, %v625_v40 }
 0x1ec   : > { %664 = vst [vmem:[%s1010_s16 + $0x58] sm:$0xff] %v634_v39 }
 0x1ed   : > { %662 = vst [vmem:[%s1010_s16 + $0x48] sm:$0xff] %v626_v41 }
 0x1ef   : > { %v856_v42 = vpop.f32.mrb[12].mxu1 }
 0x1f0   : > { %v647_v43 = vadd.f32 %v856_v42, %v751_v17  ;;  %v638_v44 = vpop.f32.mrb[13].mxu1 }
 0x1f1   : > { %v639_v45 = vadd.f32 %v751_v17, %v638_v44  ;;  %v857_v46 = vpop.f32.mrb[14].mxu1 }
 0x1f2   : > { %667 = vst [vmem:[%s1010_s16 + $0x70] sm:$0xff] %v647_v43  ;;  %v650_v47 = vadd.f32 %v857_v46, %v751_v17  ;;  %v641_v48 = vpop.f32.mrb[15].mxu1 }
 0x1f3   : > { %665 = vst [vmem:[%s1010_s16 + $0x60] sm:$0xff] %v639_v45  ;;  %v642_v49 = vadd.f32 %v751_v17, %v641_v48 }
 0x1f4   : > { %668 = vst [vmem:[%s1010_s16 + $0x78] sm:$0xff] %v650_v47 }
 0x1f5   : > { %666 = vst [vmem:[%s1010_s16 + $0x68] sm:$0xff] %v642_v49 }
 0x1f6 PF: > { %s15_s18 = sadd.s32 1, %s896_s18  }
 0x1f7   : > { %p12_p4 = scmp.ge.s32.totalorder %s15_s18, 4  }
 0x1f9   :  { %14 = sbr.rel (!%p12_p4) target bundleno = 1 (0x1), region = 70 }

</bundles_post_ra>
